<compile_context>
chip_gen: v7x
topology: tpu7x:2x2x1
jax: 0.10.0
libtpu: 0.0.40
codegen_flags: <defaults>
</compile_context>

<pallas_src>
import math
import jax
import jax.numpy as jnp
from jax.experimental import pallas as pl
from jax.experimental.pallas import tpu as pltpu


# --------------------------------------------------------------------------- #
# Kernel
# --------------------------------------------------------------------------- #
def _pos_emb_kernel(x_ref, e_ref, o_ref):
    # x_ref: (bb, tT, N*C) data block
    # e_ref: (1,  tT, N*C) combined (temporal+spatial) embedding tile, resident
    #        across the inner batch sweep
    # o_ref: (bb, tT, N*C)
    o_ref[...] = x_ref[...] + e_ref[...]


# --------------------------------------------------------------------------- #
# Capability probes / hardware queries
# --------------------------------------------------------------------------- #
_SINGLE_BUFFER_EMB = None  # resolved lazily by _supports_single_buffer_emb()


def _supports_single_buffer_emb():
    """Probe once (eagerly) whether pipeline_mode=pl.Buffered(1) lowers here."""
    global _SINGLE_BUFFER_EMB
    if _SINGLE_BUFFER_EMB is not None:
        return _SINGLE_BUFFER_EMB
    try:
        x = jnp.zeros((8, 128), jnp.float32)

        def _probe(a_ref, b_ref, o_ref):
            o_ref[...] = a_ref[...] + b_ref[...]

        out = pl.pallas_call(
            _probe,
            out_shape=jax.ShapeDtypeStruct((8, 128), jnp.float32),
            grid=(1,),
            in_specs=[
                pl.BlockSpec((8, 128), lambda i: (0, 0)),
                pl.BlockSpec((8, 128), lambda i: (0, 0),
                             pipeline_mode=pl.Buffered(1)),
            ],
            out_specs=pl.BlockSpec((8, 128), lambda i: (0, 0)),
        )(x, x)
        jax.block_until_ready(out)
        _SINGLE_BUFFER_EMB = True
    except Exception:  # any failure -> safe default (double buffering)
        _SINGLE_BUFFER_EMB = False
    return _SINGLE_BUFFER_EMB


def _vmem_capacity_bytes():
    """Per-core VMEM capacity, with a conservative (v7x) fallback."""
    try:
        info = pltpu.get_tpu_info()
        cap = getattr(info, "vmem_capacity_bytes", None)
        if cap:
            return int(cap)
    except Exception:
        pass
    return 64 * 1024 * 1024  # v7x per-TensorCore VMEM (smallest of the three)


# --------------------------------------------------------------------------- #
# Wrapper
# --------------------------------------------------------------------------- #
def position_embedding(data, temporal_emb, spatial_emb,
                       temporal=True, spatial=True, donate_data=False):
    """data: (B, T, N, C); temporal_emb: (1, T, 1, C); spatial_emb: (1, 1, N, C)."""
    B, T, N, C = data.shape
    NC = N * C

    # Operand selection in the wrapper (never stream zeros through HBM).
    if not temporal and not spatial:
        return data
    if temporal and spatial:
        emb = temporal_emb + spatial_emb                       # (1, T, N, C)
    elif temporal:
        emb = jnp.broadcast_to(temporal_emb, (1, T, N, C))
    else:
        emb = jnp.broadcast_to(spatial_emb, (1, T, N, C))

    # Lane-dense layout: last dim N*C (block always spans the full extent).
    x3 = data.reshape(B, T, NC)
    e3 = emb.astype(data.dtype).reshape(1, T, NC)
    itemsize = jnp.dtype(data.dtype).itemsize

    # ---- generation-aware VMEM budget -------------------------------------
    vmem_cap = _vmem_capacity_bytes()
    vmem_limit = int(min(vmem_cap // 2, 64 * 1024 * 1024))
    # ~2x data-in + ~2x data-out + emb buffers must fit under vmem_limit.
    target_block_bytes = max(1 << 20, min(vmem_limit // 8, 8 << 20))

    # ---- tile selection: bb over B, tT over T ------------------------------
    # Block's second-to-last dim must be a multiple of 8 or the full T extent.
    tT_opts = [d for d in range(1, T + 1) if T % d == 0 and (d % 8 == 0 or d == T)]
    bb_opts = [d for d in range(1, B + 1) if B % d == 0]
    max_steps = (T // min(tT_opts)) * B
    min_steps = min(4, max_steps)   # >= 2 steps per TensorCore on v7x if possible

    def _score(bb, tT):
        blk = bb * tT * NC * itemsize
        steps = (T // tT) * (B // bb)
        fits = blk <= target_block_bytes
        if fits and steps >= min_steps:
            return (2, blk, bb)      # best: fits and pipeline has work
        if fits:
            return (1, blk, bb)      # fits, but shape too small for min_steps
        return (0, -blk, -bb)        # nothing fits: pick the smallest legal block

    bb, tT = max(((b, t) for b in bb_opts for t in tT_opts),
                 key=lambda bt: _score(*bt))

    # T outer, B inner -> the emb tile stays resident across the whole B sweep.
    grid = (T // tT, B // bb)

    emb_spec_kwargs = {}
    if _SINGLE_BUFFER_EMB:   # constant-per-T-block operand: 1 buffer is enough
        emb_spec_kwargs["pipeline_mode"] = pl.Buffered(1)

    out3 = pl.pallas_call(
        _pos_emb_kernel,
        out_shape=jax.ShapeDtypeStruct((B, T, NC), data.dtype),
        grid=grid,
        in_specs=[
            # data streams over (T, B)
            pl.BlockSpec((bb, tT, NC), lambda t, b: (b, t, 0)),
            # embedding follows only the T axis (resident across inner B sweep)
            pl.BlockSpec((1, tT, NC), lambda t, b: (0, t, 0), **emb_spec_kwargs),
        ],
        out_specs=pl.BlockSpec((bb, tT, NC), lambda t, b: (b, t, 0)),
        # Only alias when the caller genuinely donates `data`; otherwise XLA
        # would insert a defensive full-size copy (extra HBM pass).
        input_output_aliases=({0: 0} if donate_data else {}),
        compiler_params=pltpu.CompilerParams(
            dimension_semantics=("parallel", "parallel"),
            vmem_limit_bytes=vmem_limit,
        ),
    )(x3, e3)

    return out3.reshape(B, T, N, C)


# --------------------------------------------------------------------------- #
# Parameter init (matches torch.nn.init.xavier_uniform_ for 4-D tensors)
# --------------------------------------------------------------------------- #
def _xavier_uniform(key, shape, dtype=jnp.float32):
    rf = 1
    for s in shape[2:]:
        rf *= s
    fan_in = shape[1] * rf
    fan_out = shape[0] * rf
    bound = math.sqrt(6.0 / (fan_in + fan_out))
    return jax.random.uniform(key, shape, dtype=dtype, minval=-bound, maxval=bound)


if __name__ == "__main__":
    # Shapes consistent with the module: B=2, input_length T=8,
    # num_of_vertices N=16, feature_dim C=32  (N*C = 512 -> lane-dense).
    B, T, N, C = 2, 8, 16, 32

    # Resolve the Buffered(1) probe once, eagerly (before any jit tracing).
    _supports_single_buffer_emb()

    key = jax.random.PRNGKey(0)
    k_data, k_temb, k_semb = jax.random.split(key, 3)

    data = jax.random.normal(k_data, (B, T, N, C), dtype=jnp.float32)
    temporal_emb = _xavier_uniform(k_temb, (1, T, 1, C))
    spatial_emb = _xavier_uniform(k_semb, (1, 1, N, C))

    # In a real model this should run under the surrounding jit so the fused
    # emb table construction is hoisted/CSE'd across calls.
    pe = jax.jit(position_embedding,
                 static_argnames=("temporal", "spatial", "donate_data"))

    out = pe(data, temporal_emb, spatial_emb, temporal=True, spatial=True)
    out = jax.block_until_ready(out)

    # Reference (plain JAX broadcasting, mirrors the in-place adds in torch).
    ref = data + temporal_emb + spatial_emb
    assert out.shape == (B, T, N, C)
    assert jnp.allclose(out, ref, atol=1e-6), "mismatch vs reference (both emb)"

    out_t = pe(data, temporal_emb, spatial_emb, temporal=True, spatial=False)
    assert jnp.allclose(out_t, data + temporal_emb, atol=1e-6), "mismatch (temporal only)"
    out_s = pe(data, temporal_emb, spatial_emb, temporal=False, spatial=True)
    assert jnp.allclose(out_s, data + spatial_emb, atol=1e-6), "mismatch (spatial only)"
    out_n = pe(data, temporal_emb, spatial_emb, temporal=False, spatial=False)
    assert jnp.allclose(out_n, data, atol=1e-6), "mismatch (neither)"
    jax.block_until_ready((out_t, out_s, out_n))

    print("KERNEL_OK")
</pallas_src>

<mosaic_0001>
module attributes {stable_mosaic.version = 11 : i64} {
  func.func @_probe(%arg0: i32, %arg1: memref<8x128xf32, #tpu.memory_space<vmem>>, %arg2: memref<8x128xf32, #tpu.memory_space<vmem>>, %arg3: memref<8x128xf32, #tpu.memory_space<vmem>>) attributes {dimension_semantics = [#tpu.dimension_semantics<arbitrary>], iteration_bounds = array<i64: 1>, scalar_prefetch = 0 : i64, scratch_operands = 0 : i64, tpu.core_type = #tpu.core_type<tc>, window_params = [{pipeline_mode = #tpu.pipeline_mode<synchronous>, transform_indices = @transform_0, window_bounds = array<i64: 8, 128>}, {pipeline_mode = #tpu.pipeline_mode<synchronous>, transform_indices = @transform_1, window_bounds = array<i64: 8, 128>}, {pipeline_mode = #tpu.pipeline_mode<synchronous>, transform_indices = @transform_2, window_bounds = array<i64: 8, 128>}]} {
    %c0 = arith.constant 0 : index
    %c0_0 = arith.constant 0 : index
    %0 = vector.load %arg1[%c0, %c0_0] : memref<8x128xf32, #tpu.memory_space<vmem>>, vector<8x128xf32>
    %c0_1 = arith.constant 0 : index
    %c0_2 = arith.constant 0 : index
    %1 = vector.load %arg2[%c0_1, %c0_2] : memref<8x128xf32, #tpu.memory_space<vmem>>, vector<8x128xf32>
    %2 = arith.addf %0, %1 : vector<8x128xf32>
    %c0_3 = arith.constant 0 : index
    %c0_4 = arith.constant 0 : index
    %3 = vector.load %arg3[%c0_3, %c0_4] : memref<8x128xf32, #tpu.memory_space<vmem>>, vector<8x128xf32>
    tpu.vector_store %arg3[%c0_3, %c0_4], %2 {strides = array<i32>} : memref<8x128xf32, #tpu.memory_space<vmem>>, vector<8x128xf32>,
    return
  }
  func.func @transform_0(%arg0: i32) -> (i32, i32) {
    %c0_i32 = arith.constant 0 : i32
    %c0_i32_0 = arith.constant 0 : i32
    %c0_i32_1 = arith.constant 0 : i32
    return %c0_i32, %c0_i32_0 : i32, i32
  }
  func.func @transform_1(%arg0: i32) -> (i32, i32) {
    %c0_i32 = arith.constant 0 : i32
    %c0_i32_0 = arith.constant 0 : i32
    %c0_i32_1 = arith.constant 0 : i32
    return %c0_i32, %c0_i32_0 : i32, i32
  }
  func.func @transform_2(%arg0: i32) -> (i32, i32) {
    %c0_i32 = arith.constant 0 : i32
    %c0_i32_0 = arith.constant 0 : i32
    %c0_i32_1 = arith.constant 0 : i32
    return %c0_i32, %c0_i32_0 : i32, i32
  }
}

module attributes {stable_mosaic.version = 11 : i64} {
  func.func @_pos_emb_kernel(%arg0: i32, %arg1: i32, %arg2: memref<1x8x512xf32, #tpu.memory_space<vmem>>, %arg3: memref<1x8x512xf32, #tpu.memory_space<vmem>>, %arg4: memref<1x8x512xf32, #tpu.memory_space<vmem>>) attributes {dimension_semantics = [#tpu.dimension_semantics<parallel>, #tpu.dimension_semantics<parallel>], iteration_bounds = array<i64: 1, 2>, scalar_prefetch = 0 : i64, scratch_operands = 0 : i64, tpu.core_type = #tpu.core_type<tc>, window_params = [{transform_indices = @transform_0, window_bounds = array<i64: 1, 8, 512>}, {transform_indices = @transform_1, window_bounds = array<i64: 1, 8, 512>}, {transform_indices = @transform_2, window_bounds = array<i64: 1, 8, 512>}]} {
    %c0 = arith.constant 0 : index
    %c0_0 = arith.constant 0 : index
    %c0_1 = arith.constant 0 : index
    %0 = vector.load %arg2[%c0, %c0_0, %c0_1] : memref<1x8x512xf32, #tpu.memory_space<vmem>>, vector<1x8x512xf32>
    %c0_2 = arith.constant 0 : index
    %c0_3 = arith.constant 0 : index
    %c0_4 = arith.constant 0 : index
    %1 = vector.load %arg3[%c0_2, %c0_3, %c0_4] : memref<1x8x512xf32, #tpu.memory_space<vmem>>, vector<1x8x512xf32>
    %2 = arith.addf %0, %1 : vector<1x8x512xf32>
    %c0_5 = arith.constant 0 : index
    %c0_6 = arith.constant 0 : index
    %c0_7 = arith.constant 0 : index
    %3 = vector.load %arg4[%c0_5, %c0_6, %c0_7] : memref<1x8x512xf32, #tpu.memory_space<vmem>>, vector<1x8x512xf32>
    tpu.vector_store %arg4[%c0_5, %c0_6, %c0_7], %2 {strides = array<i32>} : memref<1x8x512xf32, #tpu.memory_space<vmem>>, vector<1x8x512xf32>,
    return
  }
  func.func @transform_0(%arg0: i32, %arg1: i32) -> (i32, i32, i32) {
    %c0_i32 = arith.constant 0 : i32
    %c0_i32_0 = arith.constant 0 : i32
    return %arg1, %arg0, %c0_i32 : i32, i32, i32
  }
  func.func @transform_1(%arg0: i32, %arg1: i32) -> (i32, i32, i32) {
    %c0_i32 = arith.constant 0 : i32
    %c0_i32_0 = arith.constant 0 : i32
    %c0_i32_1 = arith.constant 0 : i32
    return %c0_i32, %arg0, %c0_i32_0 : i32, i32, i32
  }
  func.func @transform_2(%arg0: i32, %arg1: i32) -> (i32, i32, i32) {
    %c0_i32 = arith.constant 0 : i32
    %c0_i32_0 = arith.constant 0 : i32
    return %arg1, %arg0, %c0_i32 : i32, i32, i32
  }
}

</mosaic_0001>

<bundles_post_ra>
// kernel: tpu_custom_call.1
= control target key start
LH: loop header
LB: loop body
LE: loop exit
PB: predicated region body
PF: predicated region fallthrough
CT: control target
= control target key end

     0   :  { %7 = vsyncpa [#allocation3], 0  ;;  %s185_s0 = inlined_call_operand.hbm [shape: f32[8,128], index: 0, kind: input, shape index: {}]   ;;  %s186_s1 = inlined_call_operand.hbm [shape: f32[8,128], index: 1, kind: input, shape index: {}]   ;;  %s187_s2 = inlined_call_operand.hbm [shape: f32[8,128], index: 2, kind: output, shape index: {}]  }
   0x1   :  { %8 = vsyncpa [#allocation6], 0 }
   0x2   :  { %9 = vsyncpa [#allocation4], 0  ;;  %s131_s9 = smov [#allocation2]   ;;  %s132_s11 = smov [#allocation5]  }
   0x3   :  { %s16_s10 = sshll.u32 %s131_s9, 4  ;;  %s26_s12 = sshll.u32 %s132_s11, 4  ;;  %s17_s10 = int_to_ptr.vmem [resolvable:$true] %s16_s10  ;;  %s27_s12 = int_to_ptr.vmem [resolvable:$true] %s26_s12 }
   0x4   :  { %s59_s15 = scalar_lea.hbm %s185_s0, 128 }
   0x5   :  { %p60_p0 = scmp.ne.s32.totalorder %s185_s0, %s59_s15  ;;  %p63_p1 = scmp.lt.u32.totalorder %s59_s15, %s185_s0 }
   0x7   :  { %p65_p2 = pnand %p63_p1, %p60_p0 }
   0x9   :  { %68 = shalt.err (!%p65_p2)
}
   0xa   :  { %s69_s20 = scalar_lea.vmem %s17_s10, 128  ;;  %p74_p4 = scmp.lt.s32.totalorder %s17_s10, %s17_s10 }
   0xb   :  { %p70_p3 = scmp.ne.s32.totalorder %s17_s10, %s69_s20  ;;  %p75_p5 = scmp.lt.s32.totalorder %s69_s20, %s69_s20 }
   0xd   :  { %p76_p6 = por %p75_p5, %p74_p4 }
   0xf   :  { %p77_p7 = pnand %p76_p6, %p70_p3 }
  0x11   :  { %80 = shalt.err (!%p77_p7)
}
  0x12   :  { %19 = dma.hbm_to_vmem [thread:$0]  %s185_s0, 128, %s17_s10, [#allocation3]  }
  0x13   :  { %s81_s25 = scalar_lea.hbm %s186_s1, 128 }
  0x14   :  { %p82_p8 = scmp.ne.s32.totalorder %s186_s1, %s81_s25  ;;  %p85_p9 = scmp.lt.u32.totalorder %s81_s25, %s186_s1 }
  0x16   :  { %p87_p10 = pnand %p85_p9, %p82_p8 }
  0x18   :  { %90 = shalt.err (!%p87_p10)
}
  0x19   :  { %s91_s30 = scalar_lea.vmem %s27_s12, 128  ;;  %p96_p12 = scmp.lt.s32.totalorder %s27_s12, %s27_s12 }
  0x1a   :  { %p92_p11 = scmp.ne.s32.totalorder %s27_s12, %s91_s30  ;;  %p97_p13 = scmp.lt.s32.totalorder %s91_s30, %s91_s30 }
  0x1c   :  { %p98_p0 = por %p97_p13, %p96_p12 }
  0x1e   :  { %p99_p1 = pnand %p98_p0, %p92_p11 }
  0x20   :  { %102 = shalt.err (!%p99_p1)
}
  0x21   :  { %29 = dma.hbm_to_vmem [thread:$0]  %s186_s1, 128, %s27_s12, [#allocation6]  }
  0x22   :  { %125 = dma.done.wait [#allocation3], 128  }
  0x23   :  { %126 = vsyncadd [#allocation3], 4294967168 }
  0x24   :  { %127 = dma.done.wait [#allocation6], 128  }
  0x25   :  { %128 = vsyncadd [#allocation6], 4294967168  ;;  %s133_s4 = smov [#allocation7]   ;;  %v36_v0 = vld [vmem:[#allocation2] sm:$0xff]  ;;  %v37_v1 = vld [vmem:[#allocation5] sm:$0xff] }
  0x26   :  { %s46_s5 = sshll.u32 %s133_s4, 4  ;;  %v38_v2 = vadd.f32 %v37_v1, %v36_v0  ;;  %s47_s5 = int_to_ptr.vmem [resolvable:$true] %s46_s5 }
  0x27   :  { %s103_s6 = scalar_lea.vmem %s47_s5, 128  ;;  %p108_p3 = scmp.lt.s32.totalorder %s47_s5, %s47_s5 }
  0x28   :  { %39 = vst [vmem:[#allocation7] sm:$0xff] %v38_v2  ;;  %p104_p2 = scmp.ne.s32.totalorder %s47_s5, %s103_s6  ;;  %p109_p4 = scmp.lt.s32.totalorder %s103_s6, %s103_s6 }
  0x2a   :  { %p110_p5 = por %p109_p4, %p108_p3 }
  0x2c   :  { %p111_p6 = pnand %p110_p5, %p104_p2 }
  0x2e   :  { %114 = shalt.err (!%p111_p6)
}
  0x2f   :  { %s115_s8 = scalar_lea.hbm %s187_s2, 128 }
  0x30   :  { %p116_p7 = scmp.ne.s32.totalorder %s187_s2, %s115_s8  ;;  %p119_p8 = scmp.lt.u32.totalorder %s115_s8, %s187_s2 }
  0x32   :  { %p121_p9 = pnand %p119_p8, %p116_p7 }
  0x34   :  { %124 = shalt.err (!%p121_p9)
}
  0x35   :  { %49 = dma.vmem_to_hbm [thread:$0]  %s47_s5, 128, %s187_s2, [#allocation4]  }
  0x36   :  { %129 = dma.done.wait [#allocation4], 128  }
  0x37   :  { %130 = vsyncadd [#allocation4], 4294967168 }
  0x38   :  { %53 = vsyncpa [#allocation3], 1 }
  0x39   :  { %54 = vsyncpa [#allocation6], 1 }
  0x3a   :  { %55 = vsyncpa [#allocation4], 1 }

// kernel: position_embedding.1
= control target key start
LH: loop header
LB: loop body
LE: loop exit
PB: predicated region body
PF: predicated region fallthrough
CT: control target
= control target key end

     0   :  { %s401_s9 = smov 0   ;;  %s403_s10 = smov 0   ;;  %s443_s0 = inlined_call_operand.vmem [shape: f32[2,8,512], index: 0, kind: input, shape index: {}]   ;;  %s444_s1 = inlined_call_operand.vmem [shape: f32[1,8,512], index: 1, kind: input, shape index: {}]   ;;  %s445_s2 = inlined_call_operand.vmem [shape: f32[2,8,512], index: 2, kind: output, shape index: {}]  }
   0x1   :  { %s405_s11 = smov 0  }
   0x2 LB: > { %s21_s12 = sadd.s32 1, %s380_s10  ;;  %p329_p0 = scmp.ge.s32.totalorder %s384_s11, 1  ;;  %s384_s11 = sphi %s405_s11, %s12_s11   ;;  %s380_s10 = sphi %s403_s10, %s447_s10   ;;  %s376_s9 = sphi %s401_s9, %s446_s9  }
   0x3   : > { %p22_p1 = scmp.ge.s32.totalorder %s21_s12, 2  ;;  %p142_p2 = scmp.lt.s32.totalorder %s384_s11, 3 }
   0x5   : > { %s449_s12 = smov (%p22_p1, %s21_s12), 0  ;;  %p143_p3 = pnand %p329_p0, %p142_p2 }
   0x6   : > { %p177_p4 = scmp.lt.s32.totalorder (!%p143_p3), %s376_s9, 1  ;;  %v204_v0 = vld [vmem:[%s444_s1] sm:$0xff] (!%p143_p3)  ;;  %v205_v1 = vld [vmem:[%s444_s1 + $0x8] sm:$0xff] (!%p143_p3)  ;;  %v206_v2 = vld [vmem:[%s444_s1 + $0x10] sm:$0xff] (!%p143_p3) }
   0x7   : > { %146 = sbr.rel (%p143_p3) target bundleno = 22 (0x16), region = 28  ;;  %v207_v3 = vld [vmem:[%s444_s1 + $0x18] sm:$0xff] (!%p143_p3) }
   0xe   : > { %s451_s9 = smov (!%p177_p4, %s376_s9), 1 }
   0xf   : > { %s336_s13 = sshll.u32 %s451_s9, 5 }
  0x10   : > { %s185_s22 = scalar_lea.vmem %s443_s0, %s336_s13  ;;  %s199_s27 = scalar_lea.vmem %s445_s2, %s336_s13 }
  0x11   : > { %v200_v4 = vld [vmem:[%s185_s22] sm:$0xff]  ;;  %v201_v5 = vld [vmem:[%s185_s22 + $0x8] sm:$0xff]  ;;  %v202_v6 = vld [vmem:[%s185_s22 + $0x10] sm:$0xff] }
  0x12   : > { %v208_v7 = vadd.f32 %v204_v0, %v200_v4  ;;  %v209_v8 = vadd.f32 %v205_v1, %v201_v5  ;;  %v210_v9 = vadd.f32 %v206_v2, %v202_v6  ;;  %v203_v10 = vld [vmem:[%s185_s22 + $0x18] sm:$0xff] }
  0x13   : > { %v211_v11 = vadd.f32 %v207_v3, %v203_v10 }
  0x14   : > { %212 = vst [vmem:[%s199_s27] sm:$0xff] %v208_v7  ;;  %213 = vst [vmem:[%s199_s27 + $0x8] sm:$0xff] %v209_v8 }
  0x15   : > { %214 = vst [vmem:[%s199_s27 + $0x10] sm:$0xff] %v210_v9  ;;  %215 = vst [vmem:[%s199_s27 + $0x18] sm:$0xff] %v211_v11 }
  0x16 PF: > { %s12_s11 = sadd.s32 1, %s384_s11   ;;  %s446_s9 = smov %s380_s10 }
  0x17   : > { %p9_p5 = scmp.ge.s32.totalorder %s12_s11, 4   ;;  %s447_s10 = smov %s449_s12 }
  0x19   :  { %11 = sbr.rel (!%p9_p5) target bundleno = 2 (0x2), region = 61 }

</bundles_post_ra>
